<compile_context>
chip_gen: v7x
topology: tpu7x:2x2x1
jax: 0.10.0
libtpu: 0.0.40
codegen_flags: <defaults>
</compile_context>

<pallas_src>
import functools

import jax
import jax.numpy as jnp
from jax.experimental import pallas as pl
from jax.experimental.pallas import tpu as pltpu


def _round_up(x, m):
    return ((x + m - 1) // m) * m


def _aug_att_kernel(x_ref, w_ref, b_ref, q_in_ref, k_in_ref,
                    q_out_ref, k_out_ref, *,
                    n_heads, aug_per_head, head_dim, aug_dim):
    # x_ref:    (1, TS, hidden)
    # w_ref:    (hidden, N_pad)      -- per-head-permuted, zero-padded columns
    # b_ref:    (1, N_pad)           -- f32
    # q_in_ref: (1, n_heads, TS, head_dim)
    # q_out_ref:(1, n_heads, TS, head_dim + aug_per_head)
    proj = jnp.dot(x_ref[0], w_ref[...], preferred_element_type=jnp.float32)
    proj = proj + b_ref[...]                      # (TS, N_pad), f32
    out_dtype = q_out_ref.dtype

    for h in range(n_heads):                      # static unroll over heads
        lo = h * aug_per_head
        hi = lo + aug_per_head
        # q_out[b, h] = concat(query_layer[b, h], y4[b, h]) along last dim
        q_out_ref[0, h, :, 0:head_dim] = q_in_ref[0, h, :, :].astype(out_dtype)
        q_out_ref[0, h, :, head_dim:] = proj[:, lo:hi].astype(out_dtype)
        # k_out[b, h] = concat(key_layer[b, h], z4[b, h]) along last dim
        k_out_ref[0, h, :, 0:head_dim] = k_in_ref[0, h, :, :].astype(out_dtype)
        k_out_ref[0, h, :, head_dim:] = (
            proj[:, aug_dim + lo:aug_dim + hi].astype(out_dtype))


def _prepare_params(w_t, b, aug_dim, n_heads):
    """Permute Linear columns per-head and pad to a lane-dense width.

    PyTorch:  y4[b, h, s, a] = (xW^T + b)[b, s, a * n_heads + h]   (a < aug_dim//n_heads)
    We reorder the columns so that head h's columns sit contiguously at
    [h*aph, (h+1)*aph), which turns the view/permute into a plain slice
    inside the kernel.
    """
    hidden = w_t.shape[0]
    aph = aug_dim // n_heads
    # new position h*aph + a  <-  original column a*n_heads + h
    perm = jnp.arange(aug_dim).reshape(aph, n_heads).T.reshape(-1)

    w_y = w_t[:, :aug_dim][:, perm]
    w_z = w_t[:, aug_dim:][:, perm]
    b_y = b[:aug_dim][perm]
    b_z = b[aug_dim:][perm]

    n_pad = max(128, _round_up(2 * aug_dim, 128))
    pad_cols = n_pad - 2 * aug_dim
    w_packed = jnp.concatenate(
        [w_y, w_z, jnp.zeros((hidden, pad_cols), w_t.dtype)], axis=1)
    b_packed = jnp.concatenate(
        [b_y, b_z, jnp.zeros((pad_cols,), b.dtype)], axis=0)
    return w_packed, b_packed.reshape(1, n_pad).astype(jnp.float32), n_pad


def aug_att_forward(x, query_layer, key_layer, w_t, b, aug_dim, n_heads,
                    *, ts=256, compute_dtype=None):
    """Fused AugAtt forward.

    x            : (bsz, seq, hidden)
    query_layer  : (bsz, n_heads, seq, head_dim)
    key_layer    : (bsz, n_heads, seq, head_dim)
    w_t          : (hidden, 2*aug_dim)   (transposed PyTorch Linear weight)
    b            : (2*aug_dim,)
    compute_dtype: optional (e.g. jnp.bfloat16) to halve HBM bytes of x / W
                   on v6e / v7x; accumulation stays f32.
    """
    bsz, seq, hidden = x.shape
    _, _, _, head_dim = query_layer.shape
    aph = aug_dim // n_heads
    out_d = head_dim + aph
    out_dtype = query_layer.dtype

    w_packed, b_packed, n_pad = _prepare_params(w_t, b, aug_dim, n_heads)
    if compute_dtype is not None:
        x = x.astype(compute_dtype)
        w_packed = w_packed.astype(compute_dtype)

    # Seq tiling: pipelined tiles, sublane-aligned; fall back to full-seq blocks
    # when seq does not divide cleanly.
    ts = max(1, min(ts, seq))
    if seq % ts != 0 or (ts != seq and ts % 8 != 0):
        # TODO(synk): pad seq instead of falling back to full-seq blocks for ragged lengths.
        ts = seq
    n_seq_tiles = seq // ts

    kernel = functools.partial(
        _aug_att_kernel,
        n_heads=n_heads, aug_per_head=aph, head_dim=head_dim, aug_dim=aug_dim)

    x_bytes = x.size * x.dtype.itemsize
    w_bytes = w_packed.size * w_packed.dtype.itemsize
    qk_in_bytes = 2 * query_layer.size * query_layer.dtype.itemsize
    qk_out_bytes = 2 * bsz * n_heads * seq * out_d * jnp.dtype(out_dtype).itemsize
    cost = pl.CostEstimate(
        flops=2 * bsz * seq * hidden * n_pad,
        transcendentals=0,
        bytes_accessed=int(x_bytes + w_bytes + b_packed.size * 4
                           + qk_in_bytes + qk_out_bytes),
    )

    grid_spec = pltpu.PrefetchScalarGridSpec(
        num_scalar_prefetch=0,
        grid=(bsz, n_seq_tiles),
        in_specs=[
            pl.BlockSpec((1, ts, hidden), lambda bi, si: (bi, si, 0)),
            pl.BlockSpec((hidden, n_pad), lambda bi, si: (0, 0)),   # resident weight
            pl.BlockSpec((1, n_pad), lambda bi, si: (0, 0)),        # resident bias
            pl.BlockSpec((1, n_heads, ts, head_dim), lambda bi, si: (bi, 0, si, 0)),
            pl.BlockSpec((1, n_heads, ts, head_dim), lambda bi, si: (bi, 0, si, 0)),
        ],
        out_specs=[
            pl.BlockSpec((1, n_heads, ts, out_d), lambda bi, si: (bi, 0, si, 0)),
            pl.BlockSpec((1, n_heads, ts, out_d), lambda bi, si: (bi, 0, si, 0)),
        ],
    )

    q_out, k_out = pl.pallas_call(
        kernel,
        out_shape=(
            jax.ShapeDtypeStruct((bsz, n_heads, seq, out_d), out_dtype),
            jax.ShapeDtypeStruct((bsz, n_heads, seq, out_d), out_dtype),
        ),
        grid_spec=grid_spec,
        compiler_params=pltpu.CompilerParams(
            dimension_semantics=("parallel", "parallel")),
        cost_estimate=cost,
    )(x, w_packed, b_packed, query_layer, key_layer)
    return q_out, k_out


def _reference(x, query_layer, key_layer, w_t, b, aug_dim, n_heads):
    bsz, seq, hidden = x.shape
    proj = x.reshape(-1, hidden) @ w_t + b
    proj = proj.reshape(bsz, seq, 2 * aug_dim)
    y = proj[..., :aug_dim].reshape(bsz, seq, -1, n_heads).transpose(0, 3, 1, 2)
    z = proj[..., aug_dim:].reshape(bsz, seq, -1, n_heads).transpose(0, 3, 1, 2)
    q_ref = jnp.concatenate([query_layer, y], axis=-1)
    k_ref = jnp.concatenate([key_layer, z], axis=-1)
    return q_ref, k_ref


if __name__ == "__main__":
    # Small config consistent with the module.
    bsz, seq = 2, 16
    hidden = 32
    n_heads = 4
    head_dim = hidden // n_heads   # 8
    aug_dim = 8                    # divisible by n_heads -> aug_per_head = 2

    key = jax.random.PRNGKey(0)
    k_x, k_q, k_k, k_w, k_b = jax.random.split(key, 5)

    x = jax.random.normal(k_x, (bsz, seq, hidden), dtype=jnp.float32)
    query_layer = jax.random.normal(k_q, (bsz, n_heads, seq, head_dim), dtype=jnp.float32)
    key_layer = jax.random.normal(k_k, (bsz, n_heads, seq, head_dim), dtype=jnp.float32)

    # PyTorch Linear weight is (2*aug_dim, hidden); we store its transpose.
    w_t = (jax.random.normal(k_w, (hidden, 2 * aug_dim), dtype=jnp.float32)
           / jnp.sqrt(hidden))
    b = jax.random.normal(k_b, (2 * aug_dim,), dtype=jnp.float32) * 0.01

    # f32 path (ts=8 -> grid (2, 2) exercises multi-tile pipelining + residency).
    q_out, k_out = aug_att_forward(x, query_layer, key_layer, w_t, b,
                                   aug_dim, n_heads, ts=8)
    q_out = jax.block_until_ready(q_out)
    k_out = jax.block_until_ready(k_out)

    q_ref, k_ref = _reference(x, query_layer, key_layer, w_t, b, aug_dim, n_heads)

    assert q_out.shape == (bsz, n_heads, seq, head_dim + aug_dim // n_heads)
    assert k_out.shape == (bsz, n_heads, seq, head_dim + aug_dim // n_heads)
    assert jnp.allclose(q_out, q_ref, atol=1e-5, rtol=1e-5)
    assert jnp.allclose(k_out, k_ref, atol=1e-5, rtol=1e-5)

    # bf16-input path (HBM-byte halving on v6e/v7x); f32 accumulate, looser tol.
    q_bf, k_bf = aug_att_forward(x, query_layer, key_layer, w_t, b,
                                 aug_dim, n_heads, ts=8,
                                 compute_dtype=jnp.bfloat16)
    q_bf = jax.block_until_ready(q_bf)
    k_bf = jax.block_until_ready(k_bf)
    assert jnp.allclose(q_bf, q_ref, atol=5e-2, rtol=5e-2)
    assert jnp.allclose(k_bf, k_ref, atol=5e-2, rtol=5e-2)

    print("KERNEL_OK")
</pallas_src>

<mosaic_0001>
module attributes {stable_mosaic.version = 11 : i64} {
  func.func @_aug_att_kernel(%arg0: i32, %arg1: i32, %arg2: memref<1x8x32xf32, #tpu.memory_space<vmem>>, %arg3: memref<32x128xf32, #tpu.memory_space<vmem>>, %arg4: memref<1x128xf32, #tpu.memory_space<vmem>>, %arg5: memref<1x4x8x8xf32, #tpu.memory_space<vmem>>, %arg6: memref<1x4x8x8xf32, #tpu.memory_space<vmem>>, %arg7: memref<1x4x8x10xf32, #tpu.memory_space<vmem>>, %arg8: memref<1x4x8x10xf32, #tpu.memory_space<vmem>>) attributes {dimension_semantics = [#tpu.dimension_semantics<parallel>, #tpu.dimension_semantics<parallel>], iteration_bounds = array<i64: 2, 2>, scalar_prefetch = 0 : i64, scratch_operands = 0 : i64, tpu.core_type = #tpu.core_type<tc>, window_params = [{transform_indices = @transform_0, window_bounds = array<i64: 1, 8, 32>}, {pipeline_mode = #tpu.pipeline_mode<synchronous>, transform_indices = @transform_1, window_bounds = array<i64: 32, 128>}, {pipeline_mode = #tpu.pipeline_mode<synchronous>, transform_indices = @transform_2, window_bounds = array<i64: 1, 128>}, {transform_indices = @transform_3, window_bounds = array<i64: 1, 4, 8, 8>}, {transform_indices = @transform_4, window_bounds = array<i64: 1, 4, 8, 8>}, {transform_indices = @transform_5, window_bounds = array<i64: 1, 4, 8, 10>}, {transform_indices = @transform_6, window_bounds = array<i64: 1, 4, 8, 10>}]} {
    %c0 = arith.constant 0 : index
    %c0_0 = arith.constant 0 : index
    %c0_1 = arith.constant 0 : index
    %0 = vector.load %arg2[%c0, %c0_0, %c0_1] : memref<1x8x32xf32, #tpu.memory_space<vmem>>, vector<1x8x32xf32>
    %1 = vector.shape_cast %0 : vector<1x8x32xf32> to vector<8x32xf32>
    %c0_2 = arith.constant 0 : index
    %c0_3 = arith.constant 0 : index
    %2 = vector.load %arg3[%c0_2, %c0_3] : memref<32x128xf32, #tpu.memory_space<vmem>>, vector<32x128xf32>
    %cst = arith.constant dense<0.000000e+00> : vector<8x128xf32>
    %3 = tpu.matmul %1, %2, %cst {dimension_numbers = #tpu.dot_dimension_numbers<[1], [0], [0], [1], [0, 0, 1, 1], [], []>} : vector<8x32xf32>, vector<32x128xf32>, vector<8x128xf32> -> vector<8x128xf32>
    %c0_4 = arith.constant 0 : index
    %c0_5 = arith.constant 0 : index
    %4 = vector.load %arg4[%c0_4, %c0_5] : memref<1x128xf32, #tpu.memory_space<vmem>>, vector<1x128xf32>
    %5 = vector.broadcast %4 : vector<1x128xf32> to vector<8x128xf32>
    %6 = arith.addf %3, %5 : vector<8x128xf32>
    %c0_6 = arith.constant 0 : index
    %c0_7 = arith.constant 0 : index
    %c0_8 = arith.constant 0 : index
    %c0_9 = arith.constant 0 : index
    %7 = vector.load %arg5[%c0_6, %c0_7, %c0_8, %c0_9] : memref<1x4x8x8xf32, #tpu.memory_space<vmem>>, vector<1x1x8x8xf32>
    %8 = vector.shape_cast %7 : vector<1x1x8x8xf32> to vector<8x8xf32>
    %c0_10 = arith.constant 0 : index
    %c0_11 = arith.constant 0 : index
    %c0_12 = arith.constant 0 : index
    %c0_13 = arith.constant 0 : index
    %9 = vector.load %arg7[%c0_10, %c0_11, %c0_12, %c0_13] : memref<1x4x8x10xf32, #tpu.memory_space<vmem>>, vector<1x1x8x8xf32>
    %10 = vector.shape_cast %9 : vector<1x1x8x8xf32> to vector<8x8xf32>
    %11 = vector.shape_cast %8 : vector<8x8xf32> to vector<1x1x8x8xf32>
    tpu.vector_store %arg7[%c0_10, %c0_11, %c0_12, %c0_13], %11 {strides = array<i32>} : memref<1x4x8x10xf32, #tpu.memory_space<vmem>>, vector<1x1x8x8xf32>,
    %12 = vector.extract_strided_slice %6 {offsets = [0, 0], sizes = [8, 2], strides = [1, 1]} : vector<8x128xf32> to vector<8x2xf32>
    %c0_14 = arith.constant 0 : index
    %c0_15 = arith.constant 0 : index
    %c0_16 = arith.constant 0 : index
    %c8 = arith.constant 8 : index
    %13 = vector.load %arg7[%c0_14, %c0_15, %c0_16, %c8] : memref<1x4x8x10xf32, #tpu.memory_space<vmem>>, vector<1x1x8x2xf32>
    %14 = vector.shape_cast %13 : vector<1x1x8x2xf32> to vector<8x2xf32>
    %15 = vector.shape_cast %12 : vector<8x2xf32> to vector<1x1x8x2xf32>
    tpu.vector_store %arg7[%c0_14, %c0_15, %c0_16, %c8], %15 {strides = array<i32>} : memref<1x4x8x10xf32, #tpu.memory_space<vmem>>, vector<1x1x8x2xf32>,
    %c0_17 = arith.constant 0 : index
    %c0_18 = arith.constant 0 : index
    %c0_19 = arith.constant 0 : index
    %c0_20 = arith.constant 0 : index
    %16 = vector.load %arg6[%c0_17, %c0_18, %c0_19, %c0_20] : memref<1x4x8x8xf32, #tpu.memory_space<vmem>>, vector<1x1x8x8xf32>
    %17 = vector.shape_cast %16 : vector<1x1x8x8xf32> to vector<8x8xf32>
    %c0_21 = arith.constant 0 : index
    %c0_22 = arith.constant 0 : index
    %c0_23 = arith.constant 0 : index
    %c0_24 = arith.constant 0 : index
    %18 = vector.load %arg8[%c0_21, %c0_22, %c0_23, %c0_24] : memref<1x4x8x10xf32, #tpu.memory_space<vmem>>, vector<1x1x8x8xf32>
    %19 = vector.shape_cast %18 : vector<1x1x8x8xf32> to vector<8x8xf32>
    %20 = vector.shape_cast %17 : vector<8x8xf32> to vector<1x1x8x8xf32>
    tpu.vector_store %arg8[%c0_21, %c0_22, %c0_23, %c0_24], %20 {strides = array<i32>} : memref<1x4x8x10xf32, #tpu.memory_space<vmem>>, vector<1x1x8x8xf32>,
    %21 = vector.extract_strided_slice %6 {offsets = [0, 8], sizes = [8, 2], strides = [1, 1]} : vector<8x128xf32> to vector<8x2xf32>
    %c0_25 = arith.constant 0 : index
    %c0_26 = arith.constant 0 : index
    %c0_27 = arith.constant 0 : index
    %c8_28 = arith.constant 8 : index
    %22 = vector.load %arg8[%c0_25, %c0_26, %c0_27, %c8_28] : memref<1x4x8x10xf32, #tpu.memory_space<vmem>>, vector<1x1x8x2xf32>
    %23 = vector.shape_cast %22 : vector<1x1x8x2xf32> to vector<8x2xf32>
    %24 = vector.shape_cast %21 : vector<8x2xf32> to vector<1x1x8x2xf32>
    tpu.vector_store %arg8[%c0_25, %c0_26, %c0_27, %c8_28], %24 {strides = array<i32>} : memref<1x4x8x10xf32, #tpu.memory_space<vmem>>, vector<1x1x8x2xf32>,
    %c0_29 = arith.constant 0 : index
    %c1 = arith.constant 1 : index
    %c0_30 = arith.constant 0 : index
    %c0_31 = arith.constant 0 : index
    %25 = vector.load %arg5[%c0_29, %c1, %c0_30, %c0_31] : memref<1x4x8x8xf32, #tpu.memory_space<vmem>>, vector<1x1x8x8xf32>
    %26 = vector.shape_cast %25 : vector<1x1x8x8xf32> to vector<8x8xf32>
    %c0_32 = arith.constant 0 : index
    %c1_33 = arith.constant 1 : index
    %c0_34 = arith.constant 0 : index
    %c0_35 = arith.constant 0 : index
    %27 = vector.load %arg7[%c0_32, %c1_33, %c0_34, %c0_35] : memref<1x4x8x10xf32, #tpu.memory_space<vmem>>, vector<1x1x8x8xf32>
    %28 = vector.shape_cast %27 : vector<1x1x8x8xf32> to vector<8x8xf32>
    %29 = vector.shape_cast %26 : vector<8x8xf32> to vector<1x1x8x8xf32>
    tpu.vector_store %arg7[%c0_32, %c1_33, %c0_34, %c0_35], %29 {strides = array<i32>} : memref<1x4x8x10xf32, #tpu.memory_space<vmem>>, vector<1x1x8x8xf32>,
    %30 = vector.extract_strided_slice %6 {offsets = [0, 2], sizes = [8, 2], strides = [1, 1]} : vector<8x128xf32> to vector<8x2xf32>
    %c0_36 = arith.constant 0 : index
    %c1_37 = arith.constant 1 : index
    %c0_38 = arith.constant 0 : index
    %c8_39 = arith.constant 8 : index
    %31 = vector.load %arg7[%c0_36, %c1_37, %c0_38, %c8_39] : memref<1x4x8x10xf32, #tpu.memory_space<vmem>>, vector<1x1x8x2xf32>
    %32 = vector.shape_cast %31 : vector<1x1x8x2xf32> to vector<8x2xf32>
    %33 = vector.shape_cast %30 : vector<8x2xf32> to vector<1x1x8x2xf32>
    tpu.vector_store %arg7[%c0_36, %c1_37, %c0_38, %c8_39], %33 {strides = array<i32>} : memref<1x4x8x10xf32, #tpu.memory_space<vmem>>, vector<1x1x8x2xf32>,
    %c0_40 = arith.constant 0 : index
    %c1_41 = arith.constant 1 : index
    %c0_42 = arith.constant 0 : index
    %c0_43 = arith.constant 0 : index
    %34 = vector.load %arg6[%c0_40, %c1_41, %c0_42, %c0_43] : memref<1x4x8x8xf32, #tpu.memory_space<vmem>>, vector<1x1x8x8xf32>
    %35 = vector.shape_cast %34 : vector<1x1x8x8xf32> to vector<8x8xf32>
    %c0_44 = arith.constant 0 : index
    %c1_45 = arith.constant 1 : index
    %c0_46 = arith.constant 0 : index
    %c0_47 = arith.constant 0 : index
    %36 = vector.load %arg8[%c0_44, %c1_45, %c0_46, %c0_47] : memref<1x4x8x10xf32, #tpu.memory_space<vmem>>, vector<1x1x8x8xf32>
    %37 = vector.shape_cast %36 : vector<1x1x8x8xf32> to vector<8x8xf32>
    %38 = vector.shape_cast %35 : vector<8x8xf32> to vector<1x1x8x8xf32>
    tpu.vector_store %arg8[%c0_44, %c1_45, %c0_46, %c0_47], %38 {strides = array<i32>} : memref<1x4x8x10xf32, #tpu.memory_space<vmem>>, vector<1x1x8x8xf32>,
    %39 = vector.extract_strided_slice %6 {offsets = [0, 10], sizes = [8, 2], strides = [1, 1]} : vector<8x128xf32> to vector<8x2xf32>
    %c0_48 = arith.constant 0 : index
    %c1_49 = arith.constant 1 : index
    %c0_50 = arith.constant 0 : index
    %c8_51 = arith.constant 8 : index
    %40 = vector.load %arg8[%c0_48, %c1_49, %c0_50, %c8_51] : memref<1x4x8x10xf32, #tpu.memory_space<vmem>>, vector<1x1x8x2xf32>
    %41 = vector.shape_cast %40 : vector<1x1x8x2xf32> to vector<8x2xf32>
    %42 = vector.shape_cast %39 : vector<8x2xf32> to vector<1x1x8x2xf32>
    tpu.vector_store %arg8[%c0_48, %c1_49, %c0_50, %c8_51], %42 {strides = array<i32>} : memref<1x4x8x10xf32, #tpu.memory_space<vmem>>, vector<1x1x8x2xf32>,
    %c0_52 = arith.constant 0 : index
    %c2 = arith.constant 2 : index
    %c0_53 = arith.constant 0 : index
    %c0_54 = arith.constant 0 : index
    %43 = vector.load %arg5[%c0_52, %c2, %c0_53, %c0_54] : memref<1x4x8x8xf32, #tpu.memory_space<vmem>>, vector<1x1x8x8xf32>
    %44 = vector.shape_cast %43 : vector<1x1x8x8xf32> to vector<8x8xf32>
    %c0_55 = arith.constant 0 : index
    %c2_56 = arith.constant 2 : index
    %c0_57 = arith.constant 0 : index
    %c0_58 = arith.constant 0 : index
    %45 = vector.load %arg7[%c0_55, %c2_56, %c0_57, %c0_58] : memref<1x4x8x10xf32, #tpu.memory_space<vmem>>, vector<1x1x8x8xf32>
    %46 = vector.shape_cast %45 : vector<1x1x8x8xf32> to vector<8x8xf32>
    %47 = vector.shape_cast %44 : vector<8x8xf32> to vector<1x1x8x8xf32>
    tpu.vector_store %arg7[%c0_55, %c2_56, %c0_57, %c0_58], %47 {strides = array<i32>} : memref<1x4x8x10xf32, #tpu.memory_space<vmem>>, vector<1x1x8x8xf32>,
    %48 = vector.extract_strided_slice %6 {offsets = [0, 4], sizes = [8, 2], strides = [1, 1]} : vector<8x128xf32> to vector<8x2xf32>
    %c0_59 = arith.constant 0 : index
    %c2_60 = arith.constant 2 : index
    %c0_61 = arith.constant 0 : index
    %c8_62 = arith.constant 8 : index
    %49 = vector.load %arg7[%c0_59, %c2_60, %c0_61, %c8_62] : memref<1x4x8x10xf32, #tpu.memory_space<vmem>>, vector<1x1x8x2xf32>
    %50 = vector.shape_cast %49 : vector<1x1x8x2xf32> to vector<8x2xf32>
    %51 = vector.shape_cast %48 : vector<8x2xf32> to vector<1x1x8x2xf32>
    tpu.vector_store %arg7[%c0_59, %c2_60, %c0_61, %c8_62], %51 {strides = array<i32>} : memref<1x4x8x10xf32, #tpu.memory_space<vmem>>, vector<1x1x8x2xf32>,
    %c0_63 = arith.constant 0 : index
    %c2_64 = arith.constant 2 : index
    %c0_65 = arith.constant 0 : index
    %c0_66 = arith.constant 0 : index
    %52 = vector.load %arg6[%c0_63, %c2_64, %c0_65, %c0_66] : memref<1x4x8x8xf32, #tpu.memory_space<vmem>>, vector<1x1x8x8xf32>
    %53 = vector.shape_cast %52 : vector<1x1x8x8xf32> to vector<8x8xf32>
    %c0_67 = arith.constant 0 : index
    %c2_68 = arith.constant 2 : index
    %c0_69 = arith.constant 0 : index
    %c0_70 = arith.constant 0 : index
    %54 = vector.load %arg8[%c0_67, %c2_68, %c0_69, %c0_70] : memref<1x4x8x10xf32, #tpu.memory_space<vmem>>, vector<1x1x8x8xf32>
    %55 = vector.shape_cast %54 : vector<1x1x8x8xf32> to vector<8x8xf32>
    %56 = vector.shape_cast %53 : vector<8x8xf32> to vector<1x1x8x8xf32>
    tpu.vector_store %arg8[%c0_67, %c2_68, %c0_69, %c0_70], %56 {strides = array<i32>} : memref<1x4x8x10xf32, #tpu.memory_space<vmem>>, vector<1x1x8x8xf32>,
    %57 = vector.extract_strided_slice %6 {offsets = [0, 12], sizes = [8, 2], strides = [1, 1]} : vector<8x128xf32> to vector<8x2xf32>
    %c0_71 = arith.constant 0 : index
    %c2_72 = arith.constant 2 : index
    %c0_73 = arith.constant 0 : index
    %c8_74 = arith.constant 8 : index
    %58 = vector.load %arg8[%c0_71, %c2_72, %c0_73, %c8_74] : memref<1x4x8x10xf32, #tpu.memory_space<vmem>>, vector<1x1x8x2xf32>
    %59 = vector.shape_cast %58 : vector<1x1x8x2xf32> to vector<8x2xf32>
    %60 = vector.shape_cast %57 : vector<8x2xf32> to vector<1x1x8x2xf32>
    tpu.vector_store %arg8[%c0_71, %c2_72, %c0_73, %c8_74], %60 {strides = array<i32>} : memref<1x4x8x10xf32, #tpu.memory_space<vmem>>, vector<1x1x8x2xf32>,
    %c0_75 = arith.constant 0 : index
    %c3 = arith.constant 3 : index
    %c0_76 = arith.constant 0 : index
    %c0_77 = arith.constant 0 : index
    %61 = vector.load %arg5[%c0_75, %c3, %c0_76, %c0_77] : memref<1x4x8x8xf32, #tpu.memory_space<vmem>>, vector<1x1x8x8xf32>
    %62 = vector.shape_cast %61 : vector<1x1x8x8xf32> to vector<8x8xf32>
    %c0_78 = arith.constant 0 : index
    %c3_79 = arith.constant 3 : index
    %c0_80 = arith.constant 0 : index
    %c0_81 = arith.constant 0 : index
    %63 = vector.load %arg7[%c0_78, %c3_79, %c0_80, %c0_81] : memref<1x4x8x10xf32, #tpu.memory_space<vmem>>, vector<1x1x8x8xf32>
    %64 = vector.shape_cast %63 : vector<1x1x8x8xf32> to vector<8x8xf32>
    %65 = vector.shape_cast %62 : vector<8x8xf32> to vector<1x1x8x8xf32>
    tpu.vector_store %arg7[%c0_78, %c3_79, %c0_80, %c0_81], %65 {strides = array<i32>} : memref<1x4x8x10xf32, #tpu.memory_space<vmem>>, vector<1x1x8x8xf32>,
    %66 = vector.extract_strided_slice %6 {offsets = [0, 6], sizes = [8, 2], strides = [1, 1]} : vector<8x128xf32> to vector<8x2xf32>
    %c0_82 = arith.constant 0 : index
    %c3_83 = arith.constant 3 : index
    %c0_84 = arith.constant 0 : index
    %c8_85 = arith.constant 8 : index
    %67 = vector.load %arg7[%c0_82, %c3_83, %c0_84, %c8_85] : memref<1x4x8x10xf32, #tpu.memory_space<vmem>>, vector<1x1x8x2xf32>
    %68 = vector.shape_cast %67 : vector<1x1x8x2xf32> to vector<8x2xf32>
    %69 = vector.shape_cast %66 : vector<8x2xf32> to vector<1x1x8x2xf32>
    tpu.vector_store %arg7[%c0_82, %c3_83, %c0_84, %c8_85], %69 {strides = array<i32>} : memref<1x4x8x10xf32, #tpu.memory_space<vmem>>, vector<1x1x8x2xf32>,
    %c0_86 = arith.constant 0 : index
    %c3_87 = arith.constant 3 : index
    %c0_88 = arith.constant 0 : index
    %c0_89 = arith.constant 0 : index
    %70 = vector.load %arg6[%c0_86, %c3_87, %c0_88, %c0_89] : memref<1x4x8x8xf32, #tpu.memory_space<vmem>>, vector<1x1x8x8xf32>
    %71 = vector.shape_cast %70 : vector<1x1x8x8xf32> to vector<8x8xf32>
    %c0_90 = arith.constant 0 : index
    %c3_91 = arith.constant 3 : index
    %c0_92 = arith.constant 0 : index
    %c0_93 = arith.constant 0 : index
    %72 = vector.load %arg8[%c0_90, %c3_91, %c0_92, %c0_93] : memref<1x4x8x10xf32, #tpu.memory_space<vmem>>, vector<1x1x8x8xf32>
    %73 = vector.shape_cast %72 : vector<1x1x8x8xf32> to vector<8x8xf32>
    %74 = vector.shape_cast %71 : vector<8x8xf32> to vector<1x1x8x8xf32>
    tpu.vector_store %arg8[%c0_90, %c3_91, %c0_92, %c0_93], %74 {strides = array<i32>} : memref<1x4x8x10xf32, #tpu.memory_space<vmem>>, vector<1x1x8x8xf32>,
    %75 = vector.extract_strided_slice %6 {offsets = [0, 14], sizes = [8, 2], strides = [1, 1]} : vector<8x128xf32> to vector<8x2xf32>
    %c0_94 = arith.constant 0 : index
    %c3_95 = arith.constant 3 : index
    %c0_96 = arith.constant 0 : index
    %c8_97 = arith.constant 8 : index
    %76 = vector.load %arg8[%c0_94, %c3_95, %c0_96, %c8_97] : memref<1x4x8x10xf32, #tpu.memory_space<vmem>>, vector<1x1x8x2xf32>
    %77 = vector.shape_cast %76 : vector<1x1x8x2xf32> to vector<8x2xf32>
    %78 = vector.shape_cast %75 : vector<8x2xf32> to vector<1x1x8x2xf32>
    tpu.vector_store %arg8[%c0_94, %c3_95, %c0_96, %c8_97], %78 {strides = array<i32>} : memref<1x4x8x10xf32, #tpu.memory_space<vmem>>, vector<1x1x8x2xf32>,
    return
  }
  func.func @transform_0(%arg0: i32, %arg1: i32) -> (i32, i32, i32) {
    %c0_i32 = arith.constant 0 : i32
    %c0_i32_0 = arith.constant 0 : i32
    return %arg0, %arg1, %c0_i32 : i32, i32, i32
  }
  func.func @transform_1(%arg0: i32, %arg1: i32) -> (i32, i32) {
    %c0_i32 = arith.constant 0 : i32
    %c0_i32_0 = arith.constant 0 : i32
    %c0_i32_1 = arith.constant 0 : i32
    return %c0_i32, %c0_i32_0 : i32, i32
  }
  func.func @transform_2(%arg0: i32, %arg1: i32) -> (i32, i32) {
    %c0_i32 = arith.constant 0 : i32
    %c0_i32_0 = arith.constant 0 : i32
    %c0_i32_1 = arith.constant 0 : i32
    return %c0_i32, %c0_i32_0 : i32, i32
  }
  func.func @transform_3(%arg0: i32, %arg1: i32) -> (i32, i32, i32, i32) {
    %c0_i32 = arith.constant 0 : i32
    %c0_i32_0 = arith.constant 0 : i32
    %c0_i32_1 = arith.constant 0 : i32
    return %arg0, %c0_i32, %arg1, %c0_i32_0 : i32, i32, i32, i32
  }
  func.func @transform_4(%arg0: i32, %arg1: i32) -> (i32, i32, i32, i32) {
    %c0_i32 = arith.constant 0 : i32
    %c0_i32_0 = arith.constant 0 : i32
    %c0_i32_1 = arith.constant 0 : i32
    return %arg0, %c0_i32, %arg1, %c0_i32_0 : i32, i32, i32, i32
  }
  func.func @transform_5(%arg0: i32, %arg1: i32) -> (i32, i32, i32, i32) {
    %c0_i32 = arith.constant 0 : i32
    %c0_i32_0 = arith.constant 0 : i32
    %c0_i32_1 = arith.constant 0 : i32
    return %arg0, %c0_i32, %arg1, %c0_i32_0 : i32, i32, i32, i32
  }
  func.func @transform_6(%arg0: i32, %arg1: i32) -> (i32, i32, i32, i32) {
    %c0_i32 = arith.constant 0 : i32
    %c0_i32_0 = arith.constant 0 : i32
    %c0_i32_1 = arith.constant 0 : i32
    return %arg0, %c0_i32, %arg1, %c0_i32_0 : i32, i32, i32, i32
  }
}

</mosaic_0001>

<bundles_post_ra>
// kernel: tpu_custom_call.1
= control target key start
LH: loop header
LB: loop body
LE: loop exit
PB: predicated region body
PF: predicated region fallthrough
CT: control target
= control target key end

     0   :  { %s1050_s21 = smov 0   ;;  %s1052_s22 = smov 0   ;;  %s1233_s0 = inlined_call_operand.vmem [shape: f32[2,16,32], index: 0, kind: input, shape index: {}]   ;;  %s1234_s1 = inlined_call_operand.vmem [shape: f32[32,128], index: 1, kind: input, shape index: {}]   ;;  %s1235_s2 = inlined_call_operand.vmem [shape: f32[1,128], index: 2, kind: input, shape index: {}]   ;;  %s1236_s3 = inlined_call_operand.vmem [shape: f32[2,4,16,8], index: 3, kind: input, shape index: {}]   ;;  %s1237_s4 = inlined_call_operand.vmem [shape: f32[2,4,16,8], index: 4, kind: input, shape index: {}]   ;;  %s1238_s5 = inlined_call_operand.vmem [shape: f32[2,4,16,10], index: 5, kind: output, shape index: {0}]   ;;  %s1239_s6 = inlined_call_operand.vmem [shape: f32[2,4,16,10], index: 6, kind: output, shape index: {1}]  }
   0x1   :  { %s1054_s23 = smov 0   ;;  %s1056_s24 = smov 0  }
   0x2   :  { %s1058_s25 = smov 0   ;;  %s1060_s26 = smov 0  }
   0x3   :  { %s1062_s27 = smov 0  }
   0x4 LB: > { %s26_s28 = sadd.s32 1, %s995_s25  ;;  %s29_s29 = sadd.s32 1, %s999_s26  ;;  %s1003_s27 = sphi %s1062_s27, %s17_s27   ;;  %s999_s26 = sphi %s1060_s26, %s1247_s26   ;;  %s995_s25 = sphi %s1058_s25, %s1246_s25   ;;  %s991_s24 = sphi %s1056_s24, %s1245_s24   ;;  %s987_s23 = sphi %s1054_s23, %s1244_s23   ;;  %s983_s22 = sphi %s1052_s22, %s1243_s22   ;;  %s979_s21 = sphi %s1050_s21, %s1242_s21  }
   0x5   : > { %p27_p0 = scmp.ge.s32.totalorder %s26_s28, 2  ;;  %s816_s30 = sadd.s32 4294967295, %s1003_s27  }
   0x6   : > { %p115_p1 = scmp.ne.s32.totalorder %s983_s22, %s979_s21  ;;  %p116_p2 = scmp.eq.s32.totalorder %s1003_s27, 0 }
   0x7   : > { %s1249_s28 = smov (%p27_p0, %s26_s28), 0  ;;  %s1251_s29 = smov (!%p27_p0, %s29_s29), %s999_s26 }
   0x8   : > { %p31_p3 = scmp.ge.s32.totalorder %s1251_s29, 2  ;;  %p175_p4 = scmp.eq.s32.totalorder %s816_s30, 3 }
   0x9   : > { %s104_s7 = ssub.s32 %s995_s25, %s1249_s28  ;;  %p1096_p5 = por %p116_p2, %p115_p1 }
   0xa   : > { %s1253_s29 = smov (%p31_p3, %s1251_s29), 0  ;;  %p1102_p6 = por %p175_p4, %p115_p1 }
   0xb   : > { %s103_s10 = ssub.s32 %s999_s26, %s1253_s29  ;;  %s108_s12 = sadd.s32 1, %s983_s22 }
   0xc   : > { %s105_s11 = sor.u32 %s104_s7, %s103_s10  ;;  %p819_p8 = scmp.ge.s32.totalorder %s1003_s27, 4 }
   0xd   : > { %p106_p7 = scmp.eq.s32.totalorder %s105_s11, 0 }
   0xe   : > { %231 = sbr.rel (%p819_p8) target bundleno = 37 (0x25), region = 24 }
   0xf   : > { %s1110_s13 = scalar_select %p106_p7, %s983_s22, %s108_s12  }
  0x15   : > { %245 = sbr.rel (!%p1096_p5) target bundleno = 29 (0x1d), region = 32  ;;  %s247_s14 = sand.u32 (%p1096_p5), 1, %s983_s22  }
  0x16   : > { %s821_s15 = sshll.u32 (%p1096_p5), %s999_s26, 3  ;;  %s820_s16 = sshll.u32 (%p1096_p5), %s247_s14, 5 }
  0x17   : > { %s251_s17 = sadd.s32 (%p1096_p5), %s995_s25, %s821_s15  ;;  %s249_s7 = scalar_lea.vmem (%p1096_p5), [#allocation2], %s820_s16 }
  0x18   : > { %s822_s18 = sshll.u32 (%p1096_p5), %s251_s17, 3 }
  0x19   : > { %s253_s30 = scalar_lea.vmem (%p1096_p5), %s1236_s3, %s822_s18 }
  0x1a   : > { %v287_v0 = vld [vmem:[%s253_s30] sm:$0xff] (%p1096_p5)  ;;  %v289_v1 = vld [vmem:[%s253_s30 + $0x10] sm:$0xff] (%p1096_p5) }
  0x1b   : > { %v291_v2 = vld [vmem:[%s253_s30 + $0x20] sm:$0xff] (%p1096_p5)  ;;  %288 = vst [vmem:[%s249_s7] sm:$0xff] (%p1096_p5), %v287_v0  ;;  %290 = vst [vmem:[%s249_s7 + $0x8] sm:$0xff] (%p1096_p5), %v289_v1  ;;  %v293_v3 = vld [vmem:[%s253_s30 + $0x30] sm:$0xff] (%p1096_p5) }
  0x1c   : > { %292 = vst [vmem:[%s249_s7 + $0x10] sm:$0xff] %v291_v2  ;;  %294 = vst [vmem:[%s249_s7 + $0x18] sm:$0xff] %v293_v3 }
  0x1d PF: > { %300 = sbr.rel (!%p1096_p5) target bundleno = 37 (0x25), region = 70  ;;  %s302_s10 = sand.u32 (%p1096_p5), 1, %s983_s22  }
  0x1e   : > { %s824_s11 = sshll.u32 (%p1096_p5), %s999_s26, 3  ;;  %s823_s12 = sshll.u32 (%p1096_p5), %s302_s10, 5 }
  0x1f   : > { %s306_s14 = sadd.s32 (%p1096_p5), %s995_s25, %s824_s11  ;;  %s304_s19 = scalar_lea.vmem (%p1096_p5), [#allocation3], %s823_s12 }
  0x20   : > { %s825_s15 = sshll.u32 (%p1096_p5), %s306_s14, 3 }
  0x21   : > { %s308_s16 = scalar_lea.vmem (%p1096_p5), %s1237_s4, %s825_s15 }
  0x22   : > { %v342_v4 = vld [vmem:[%s308_s16] sm:$0xff] (%p1096_p5)  ;;  %v344_v5 = vld [vmem:[%s308_s16 + $0x10] sm:$0xff] (%p1096_p5) }
  0x23   : > { %v346_v6 = vld [vmem:[%s308_s16 + $0x20] sm:$0xff] (%p1096_p5)  ;;  %343 = vst [vmem:[%s304_s19] sm:$0xff] (%p1096_p5), %v342_v4  ;;  %345 = vst [vmem:[%s304_s19 + $0x8] sm:$0xff] (%p1096_p5), %v344_v5  ;;  %v348_v7 = vld [vmem:[%s308_s16 + $0x30] sm:$0xff] (%p1096_p5) }
  0x24   : > { %347 = vst [vmem:[%s304_s19 + $0x10] sm:$0xff] %v346_v6  ;;  %349 = vst [vmem:[%s304_s19 + $0x18] sm:$0xff] %v348_v7 }
  0x25 PF: > { %p826_p9 = scmp.ge.s32.totalorder %s1003_s27, 1  ;;  %p354_p10 = scmp.lt.s32.totalorder %s1003_s27, 5 }
  0x27   : > { %p355_p11 = pnand %p826_p9, %p354_p10 }
  0x28   : > { %v421_v8 = vld [vmem:[%s1234_s1] sm:$0xff] (!%p355_p11)  ;;  %v422_v9 = vld [vmem:[%s1234_s1 + $0x8] sm:$0xff] (!%p355_p11)  ;;  %v423_v10 = vld [vmem:[%s1234_s1 + $0x10] sm:$0xff] (!%p355_p11)  ;;  %v1005_v11 = vmov (!%p355_p11), 0.0|0.0   ;;  %vm1006_vm0 = vmmov (!%p355_p11), 0   ;;  %v1007_v14 = vmov (!%p355_p11), 0.0  }
  0x29   : > { %358 = sbr.rel (%p355_p11) target bundleno = 409 (0x199), region = 108  ;;  %877 = vmatprep.subr.bf16.mxu0 (!%p355_p11), %v1005_v11  ;;  %v878_v12 = vpack.c.bf16 (!%p355_p11), %v422_v9, %v421_v8  ;;  %v424_v13 = vld [vmem:[%s1234_s1 + $0x18] sm:$0xff] (!%p355_p11)  ;;  %874 = vmatprep.mubr.msk.f32.mxu0 (!%p355_p11), %vm1006_vm0, %v1007_v14  ;;  %p412_p12 = scmp.lt.s32.totalorder (!%p355_p11), %s991_s24, 1  ;;  %vm432_vm1 = vcmask (!%p355_p11), 261120   ;;  %vm507_vm2 = vcmask (!%p355_p11), 64512   ;;  %vm513_vm3 = vcmask (!%p355_p11), 80960  }
  0x2a   : > { %p414_p13 = scmp.lt.s32.totalorder (!%p355_p11), %s987_s23, 1  ;;  %v881_v15 = vpack.c.bf16 (!%p355_p11), %v424_v13, %v423_v10  ;;  %s361_s7 = sand.u32 (!%p355_p11), 1, %s979_s21   ;;  %v833_v24 = vld [vmem:[%s1235_s2] ss:$0 sm:$0xff] (!%p355_p11) }
  0x2b   : > { %879 = vmatpush3.bf16.msra.mxu0 (!%p355_p11), %v878_v12  ;;  %s827_s10 = sshll.u32 (!%p355_p11), %s361_s7, 5  ;;  %s1011_s8 = smov (!%p355_p11), 6  }
  0x2c   : > { %880 = vmatprep.subr.bf16.mxu0 (!%p355_p11), %v1005_v11  ;;  %s370_s11 = scalar_lea.vmem (!%p355_p11), [#allocation3], %s827_s10  ;;  %s1151_s12 = scalar_lea.vmem (!%p355_p11), [#allocation5], %s827_s10 }
  0x2d   : > { %v515_v17 = vld [vmem:[%s370_s11] sm:$0xff] (!%p355_p11)  ;;  %v838_v18 = vld [vmem:[%s370_s11 + $0x8] sm:$0xff] (!%p355_p11)  ;;  %s363_s14 = scalar_lea.vmem (!%p355_p11), [#allocation2], %s827_s10  ;;  %v844_v23 = vld [vmem:[%s370_s11 + $0x10] sm:$0xff] (!%p355_p11)  ;;  %s1012_s20 = smov (!%p355_p11), 2  }
  0x2e   : > { %516 = vst.msk [vmem:[%s1151_s12] sm:$0xff] (!%p355_p11), %vm507_vm2, %v515_v17  ;;  %v506_v19 = vld [vmem:[%s363_s14] sm:$0xff] (!%p355_p11)  ;;  %839 = vst.msk [vmem:[%s1151_s12 + $0x8] sm:$0xff] (!%p355_p11), %vm507_vm2, %v838_v18  ;;  %v841_v20 = vld [vmem:[%s363_s14 + $0x10] sm:$0xff] (!%p355_p11)  ;;  %s1014_s7 = smov (!%p355_p11), 122  }
  0x2f   : > { %882 = vmatpush3.bf16.msra.mxu0 (!%p355_p11), %v881_v15  ;;  %v835_v21 = vld [vmem:[%s363_s14 + $0x8] sm:$0xff] (!%p355_p11)  ;;  %v847_v22 = vld [vmem:[%s363_s14 + $0x18] sm:$0xff] (!%p355_p11)  ;;  %845 = vst.msk [vmem:[%s1151_s12 + $0x10] sm:$0xff] (!%p355_p11), %vm507_vm2, %v844_v23 }
  0x30   : > { %s413_s15 = scalar_select %p412_p12, %s991_s24, 1  ;;  %v850_v26 = vld [vmem:[%s370_s11 + $0x18] sm:$0xff] }
  0x31   : > { %s415_s17 = scalar_select %p414_p13, %s987_s23, 1  ;;  %851 = vst.msk [vmem:[%s1151_s12 + $0x18] sm:$0xff] %vm507_vm2, %v850_v26 }
  0x32   : > { %s831_s18 = sshll.u32 %s413_s15, 1  ;;  %s1157_s15 = scalar_lea.vmem [#allocation4], %s827_s10 }
  0x33   : > { %s417_s16 = sadd.s32 %s831_s18, %s415_s17  ;;  %508 = vst.msk [vmem:[%s1157_s15] sm:$0xff] %vm507_vm2, %v506_v19  ;;  %842 = vst.msk [vmem:[%s1157_s15 + $0x10] sm:$0xff] %vm507_vm2, %v841_v20  ;;  %s1008_s18 = smov 126  }
  0x34   : > { %s832_s19 = sshll.u32 %s417_s16, 3  ;;  %836 = vst.msk [vmem:[%s1157_s15 + $0x8] sm:$0xff] %vm507_vm2, %v835_v21  ;;  %848 = vst.msk [vmem:[%s1157_s15 + $0x18] sm:$0xff] %vm507_vm2, %v847_v22  ;;  %s1009_s16 = smov 8  }
  0x35   : > { %s419_s30 = scalar_lea.vmem %s1233_s0, %s832_s19  ;;  %s1010_s19 = smov 4  }
  0x36   : > { %v420_v16 = vld [vmem:[%s419_s30] sm:$0xff]  ;;  %s1013_s30 = smov 124   ;;  %s855_s10 = sshll.u32 (%p1102_p6), %s991_s24, 3 }
  0x37   : > { %875 = vmatmul.mubr.msk.f32.vlgmr.msra.gmra.mrb[0].mxu0 %vm432_vm1, %v420_v16  ;;  %s578_s11 = sadd.s32 (%p1102_p6), %s987_s23, %s855_s10 }
  0x38   : > { %s856_s14 = sshll.u32 (%p1102_p6), %s578_s11, 3 }
 0x10a   : > { %v502_v25 = vpop.f32.mrb[0].mxu0 }
 0x10b   : > { %v503_v27 = vadd.f32 %v833_v24, %v502_v25  ;;  %v876_v28 = vpop.f32.mrb[1].mxu0 }
 0x10d   : > { %530 = vrot.lane.b32.xlu1 %v503_v27, %s1008_s18  ;;  %510 = vrot.lane.b32.xlu0 %v503_v27, %s1009_s16  ;;  %517 = vst.msk [vmem:[%s1151_s12] sm:$0xff] %vm513_vm3, %v503_v27  ;;  %s580_s18 = scalar_lea.vmem (%p1102_p6), %s1238_s5, %s856_s14 }
 0x111   : > { %538 = vrot.lane.b32.xlu1 %v503_v27, %s1010_s19  ;;  %522 = vrot.lane.b32.xlu0 %v503_v27, %s1011_s8 }
 0x115   : > { %554 = vrot.lane.b32.xlu1 %v503_v27, %s1012_s20  ;;  %546 = vrot.lane.b32.xlu0 %v503_v27, %s1013_s30 }
 0x119   : > { %562 = vrot.lane.b32.xlu0 %v503_v27, %s1014_s7 }
 0x17f   : > { %v531_v29 = vpop.permute.xlu1 %530  ;;  %v511_v30 = vpop.permute.xlu0 %510 }
 0x180   : > { %840 = vst.msk [vmem:[%s1151_s12 + $0x8] sm:$0xff] %vm513_vm3, %v531_v29  ;;  %514 = vst.msk [vmem:[%s1157_s15] sm:$0xff] %vm513_vm3, %v511_v30 }
 0x183   : > { %v539_v31 = vpop.permute.xlu1 %538  ;;  %v523_v32 = vpop.permute.xlu0 %522 }
 0x184   : > { %843 = vst.msk [vmem:[%s1157_s15 + $0x10] sm:$0xff] %vm513_vm3, %v539_v31  ;;  %837 = vst.msk [vmem:[%s1157_s15 + $0x8] sm:$0xff] %vm513_vm3, %v523_v32 }
 0x186   : > { %576 = sbr.rel (!%p1102_p6) target bundleno = 401 (0x191), region = 120 }
 0x187   : > { %v555_v33 = vpop.permute.xlu1 %554  ;;  %v547_v34 = vpop.permute.xlu0 %546  ;;  %v614_v36 = vld [vmem:[%s1157_s15] sm:$0xff] (%p1102_p6) }
 0x188   : > { %849 = vst.msk [vmem:[%s1157_s15 + $0x18] sm:$0xff] %vm513_vm3, %v555_v33  ;;  %846 = vst.msk [vmem:[%s1151_s12 + $0x10] sm:$0xff] %vm513_vm3, %v547_v34 }
 0x189   : > { %615 = vst [vmem:[%s580_s18] sm:$0xff] (%p1102_p6), %v614_v36 }
 0x18b   : > { %v563_v35 = vpop.permute.xlu0 %562  ;;  %v616_v37 = vld [vmem:[%s1157_s15 + $0x8] sm:$0xff] (%p1102_p6)  ;;  %v618_v38 = vld [vmem:[%s1157_s15 + $0x10] sm:$0xff] (%p1102_p6) }
 0x18c   : > { %852 = vst.msk [vmem:[%s1151_s12 + $0x18] sm:$0xff] %vm513_vm3, %v563_v35  ;;  %617 = vst [vmem:[%s580_s18 + $0x10] sm:$0xff] (%p1102_p6), %v616_v37 }
 0x18d   : > { %619 = vst [vmem:[%s580_s18 + $0x20] sm:$0xff] %v618_v38 }
 0x18f   : > { %v620_v39 = vld [vmem:[%s1157_s15 + $0x18] sm:$0xff] }
 0x190   : > { %621 = vst [vmem:[%s580_s18 + $0x30] sm:$0xff] %v620_v39 }
 0x191 PF: > { %627 = sbr.rel (!%p1102_p6) target bundleno = 409 (0x199), region = 158  ;;  %s857_s15 = sshll.u32 (%p1102_p6), %s991_s24, 3  ;;  %v665_v40 = vld [vmem:[%s1151_s12] sm:$0xff] (%p1102_p6)  ;;  %v667_v41 = vld [vmem:[%s1151_s12 + $0x8] sm:$0xff] (%p1102_p6) }
 0x192   : > { %s629_s16 = sadd.s32 (%p1102_p6), %s987_s23, %s857_s15 }
 0x193   : > { %v669_v42 = vld [vmem:[%s1151_s12 + $0x10] sm:$0xff] (%p1102_p6)  ;;  %s858_s19 = sshll.u32 (%p1102_p6), %s629_s16, 3 }
 0x194   : > { %s631_s30 = scalar_lea.vmem (%p1102_p6), %s1239_s6, %s858_s19 }
 0x195   : > { %666 = vst [vmem:[%s631_s30] sm:$0xff] (%p1102_p6), %v665_v40  ;;  %668 = vst [vmem:[%s631_s30 + $0x10] sm:$0xff] (%p1102_p6), %v667_v41 }
 0x196   : > { %670 = vst [vmem:[%s631_s30 + $0x20] sm:$0xff] (%p1102_p6), %v669_v42 }
 0x197   : > { %v671_v43 = vld [vmem:[%s1151_s12 + $0x18] sm:$0xff] (%p1102_p6) }
 0x198   : > { %672 = vst [vmem:[%s631_s30 + $0x30] sm:$0xff] %v671_v43 }
 0x199 PF: > { %s17_s27 = sadd.s32 1, %s1003_s27   ;;  %s1242_s21 = smov %s983_s22 }
 0x19a   : > { %p14_p0 = scmp.ge.s32.totalorder %s17_s27, 6   ;;  %s1243_s22 = smov %s1110_s13 }
 0x19b   : > { %s1244_s23 = smov %s995_s25  ;;  %s1245_s24 = smov %s999_s26 }
 0x19c   : > { %s1246_s25 = smov %s1249_s28  ;;  %s1247_s26 = smov %s1253_s29 }
 0x19d   :  { %16 = sbr.rel (!%p14_p0) target bundleno = 4 (0x4), region = 262 }

</bundles_post_ra>
